<compile_context>
chip_gen: v6e
topology: v6e:2x2x1
jax: 0.10.0
libtpu: 0.0.40
codegen_flags: <defaults>
</compile_context>

<pallas_src>
import functools

import jax
import jax.numpy as jnp
from jax import lax
from jax.experimental import pallas as pl
from jax.experimental.pallas import tpu as pltpu


def lstm_chunk_kernel(gin_ref, whh_ref, o_ref, h_ref, c_ref, *, chunk, hidden_p):
    """One time-chunk of the LSTM recurrence.

    gin_ref : (chunk, batch, 4*hidden_p) bf16  precomputed x_t @ W_ih^T + (b_ih+b_hh)
    whh_ref : (hidden_p, 4*hidden_p)     bf16  recurrent weights, transposed + zero-padded
    o_ref   : (batch, hidden_p)          f32   hidden state after the final time step
    h_ref   : (batch, hidden_p)          f32   VMEM scratch: h carried across chunks
    c_ref   : (batch, hidden_p)          f32   VMEM scratch: c carried across chunks
    """
    first = pl.program_id(0) == 0
    last = pl.program_id(0) == pl.num_programs(0) - 1

    @pl.when(first)
    def _():
        h_ref[...] = jnp.zeros_like(h_ref)
        c_ref[...] = jnp.zeros_like(c_ref)

    def step(s, carry):
        h, c = carry
        # bf16 x bf16 -> f32 recurrent matmul; whh is re-indexed from its ref per step so
        # the compiler is free to schedule the weight stream without pinning vregs across
        # the whole unrolled chunk.
        gates = gin_ref[s].astype(jnp.float32) + jnp.dot(
            h.astype(jnp.bfloat16), whh_ref[...],
            preferred_element_type=jnp.float32)
        # PyTorch gate order [i, f, g, o]; each slice starts on a 128-lane boundary.
        # Padded-lane invariant: gate pad lanes are 0 -> i/f/o pad = 0.5, g pad = 0, so
        # padded lanes of c/h stay exactly 0 (and whh's padded rows are 0 too).
        i_g = jax.nn.sigmoid(gates[:, 0 * hidden_p:1 * hidden_p])
        f_g = jax.nn.sigmoid(gates[:, 1 * hidden_p:2 * hidden_p])
        g_g = jnp.tanh(gates[:, 2 * hidden_p:3 * hidden_p])
        o_g = jax.nn.sigmoid(gates[:, 3 * hidden_p:4 * hidden_p])
        c_new = f_g * c + i_g * g_g
        h_new = o_g * jnp.tanh(c_new)
        return (h_new, c_new)

    # Bounded unroll: only `chunk` serially-dependent steps live in one trace.
    h, c = lax.fori_loop(0, chunk, step, (h_ref[...], c_ref[...]), unroll=True)
    h_ref[...] = h
    c_ref[...] = c

    @pl.when(last)
    def _():
        # out[-1] of the LSTM == hidden state after the last time step (unmasked,
        # lane-dense 128-lane store).
        o_ref[...] = h


def _pick_chunk(seq, target=4):
    """Largest divisor of seq that is <= target (time steps per grid invocation)."""
    c = min(seq, target)
    while seq % c:
        c -= 1
    return c


@jax.jit
def char_lstm_forward(x_idx, embed_table, w_ih, w_hh, b_ih, b_hh):
    """x_idx: (seq, batch) int32. Returns (batch, char_hidden) float32."""
    seq, batch = x_idx.shape
    n_char, char_dim = embed_table.shape
    hidden = w_hh.shape[1]
    hidden_p = ((hidden + 127) // 128) * 128   # lane-dense padded width per gate (>=128)
    # target=4 keeps >=2 grid steps at the tiny test shape so the cross-chunk h/c carry
    # is exercised; use 8-16 for long sequences to amortize the ~0.35us/step grid cost.
    chunk = _pick_chunk(seq, target=4)

    # --- glue: hoisted input projection over the whole vocab (one matmul), biases folded.
    proj = embed_table @ w_ih.T + (b_ih + b_hh)                    # (n_char, 4*hidden) f32
    # Pad each gate block to hidden_p lanes with zeros (keeps the padded-lane invariant),
    # then store the streamed gate-input table in bf16 (pre-nonlinearity -> forgiving).
    proj_pad = jnp.pad(
        proj.reshape(n_char, 4, hidden),
        ((0, 0), (0, 0), (0, hidden_p - hidden)),
    ).reshape(n_char, 4 * hidden_p).astype(jnp.bfloat16)
    gates_in = proj_pad[x_idx]                                     # (seq, batch, 4*hidden_p) bf16

    # --- glue: recurrent weights transposed + zero-padded to the same layout, bf16.
    whh_pad = jnp.pad(
        w_hh.T.reshape(hidden, 4, hidden),
        ((0, hidden_p - hidden), (0, 0), (0, hidden_p - hidden)),
    ).reshape(hidden_p, 4 * hidden_p).astype(jnp.bfloat16)

    # VMEM budget: double-buffered gin chunk + resident weights + output + h/c scratch.
    gin_block_bytes = chunk * batch * 4 * hidden_p * 2
    whh_bytes = hidden_p * 4 * hidden_p * 2
    out_bytes = batch * hidden_p * 4
    scratch_bytes = 2 * batch * hidden_p * 4
    vmem_limit = int(max(2 * (gin_block_bytes + whh_bytes + out_bytes)
                         + scratch_bytes + (4 << 20), 8 << 20))

    cost = pl.CostEstimate(
        flops=int(2 * seq * batch * hidden_p * 4 * hidden_p),
        transcendentals=int(5 * seq * batch * hidden_p),
        bytes_accessed=int(gates_in.size * 2 + whh_pad.size * 2 + batch * hidden_p * 4),
    )

    out_pad = pl.pallas_call(
        functools.partial(lstm_chunk_kernel, chunk=chunk, hidden_p=hidden_p),
        out_shape=jax.ShapeDtypeStruct((batch, hidden_p), jnp.float32),
        grid_spec=pltpu.PrefetchScalarGridSpec(
            num_scalar_prefetch=0,
            grid=(seq // chunk,),          # time-chunked: prefetch chunk t+1 behind chunk t
            in_specs=[
                pl.BlockSpec((chunk, batch, 4 * hidden_p), lambda t: (t, 0, 0)),
                pl.BlockSpec((hidden_p, 4 * hidden_p), lambda t: (0, 0)),
            ],
            out_specs=pl.BlockSpec((batch, hidden_p), lambda t: (0, 0)),
            scratch_shapes=[
                pltpu.VMEM((batch, hidden_p), jnp.float32),   # h carry
                pltpu.VMEM((batch, hidden_p), jnp.float32),   # c carry
            ],
        ),
        compiler_params=pltpu.CompilerParams(
            dimension_semantics=("arbitrary",),   # time axis carries state -> sequential
            vmem_limit_bytes=vmem_limit,
        ),
        cost_estimate=cost,
    )(gates_in, whh_pad)

    return out_pad[:, :hidden]


def reference_forward(x_idx, embed_table, w_ih, w_hh, b_ih, b_hh):
    """Pure-JAX f32 reference matching PyTorch nn.LSTM semantics (gate order i,f,g,o)."""
    x_emb = embed_table[x_idx]                     # (seq, batch, char_dim)
    batch = x_idx.shape[1]
    hidden = w_hh.shape[1]

    def step(carry, x_t):
        h, c = carry
        gates = x_t @ w_ih.T + b_ih + h @ w_hh.T + b_hh
        i_g, f_g, g_g, o_g = jnp.split(gates, 4, axis=-1)
        i_g = jax.nn.sigmoid(i_g)
        f_g = jax.nn.sigmoid(f_g)
        g_g = jnp.tanh(g_g)
        o_g = jax.nn.sigmoid(o_g)
        c = f_g * c + i_g * g_g
        h = o_g * jnp.tanh(c)
        return (h, c), h

    h0 = jnp.zeros((batch, hidden), jnp.float32)
    c0 = jnp.zeros((batch, hidden), jnp.float32)
    (_, _), outs = lax.scan(step, (h0, c0), x_emb)
    return outs[-1]


if __name__ == "__main__":
    # Small shapes implied by the module: char-level vocab, char embedding, char hidden.
    n_char, char_dim, char_hidden = 30, 32, 32
    seq, batch = 8, 2

    key = jax.random.PRNGKey(0)
    k_emb, k_wih, k_whh, k_bih, k_bhh, k_idx = jax.random.split(key, 6)

    # Deterministic synthetic parameters (PyTorch-style uniform init ~ 1/sqrt(hidden)).
    bound = 1.0 / jnp.sqrt(jnp.float32(char_hidden))
    embed_table = jax.random.normal(k_emb, (n_char, char_dim), jnp.float32)
    w_ih = jax.random.uniform(k_wih, (4 * char_hidden, char_dim), jnp.float32, -bound, bound)
    w_hh = jax.random.uniform(k_whh, (4 * char_hidden, char_hidden), jnp.float32, -bound, bound)
    b_ih = jax.random.uniform(k_bih, (4 * char_hidden,), jnp.float32, -bound, bound)
    b_hh = jax.random.uniform(k_bhh, (4 * char_hidden,), jnp.float32, -bound, bound)

    # Example input: character indices, shape (seq, batch) — analogous to make_vector output.
    x_idx = jax.random.randint(k_idx, (seq, batch), 0, n_char, jnp.int32)

    out = char_lstm_forward(x_idx, embed_table, w_ih, w_hh, b_ih, b_hh)
    out = jax.block_until_ready(out)

    ref = reference_forward(x_idx, embed_table, w_ih, w_hh, b_ih, b_hh)
    assert out.shape == (batch, char_hidden)
    # Tolerance relaxed vs v1: gate inputs and W_hh are stored/multiplied in bf16
    # (f32 accumulate); expected deviation from the f32 reference is ~1e-2.
    assert jnp.allclose(out, ref, atol=3e-2, rtol=3e-2), "Pallas LSTM mismatch vs reference"

    print("KERNEL_OK")
</pallas_src>

<mosaic_0001>
module attributes {stable_mosaic.version = 11 : i64} {
  func.func @lstm_chunk_kernel(%arg0: i32, %arg1: memref<4x2x512xbf16, #tpu.memory_space<vmem>>, %arg2: memref<128x512xbf16, #tpu.memory_space<vmem>>, %arg3: memref<2x128xf32, #tpu.memory_space<vmem>>, %arg4: memref<2x128xf32, #tpu.memory_space<vmem>>, %arg5: memref<2x128xf32, #tpu.memory_space<vmem>>) attributes {dimension_semantics = [#tpu.dimension_semantics<arbitrary>], iteration_bounds = array<i64: 2>, scalar_prefetch = 0 : i64, scratch_operands = 2 : i64, tpu.core_type = #tpu.core_type<tc>, window_params = [{transform_indices = @transform_0, window_bounds = array<i64: 4, 2, 512>}, {pipeline_mode = #tpu.pipeline_mode<synchronous>, transform_indices = @transform_1, window_bounds = array<i64: 128, 512>}, {pipeline_mode = #tpu.pipeline_mode<synchronous>, transform_indices = @transform_2, window_bounds = array<i64: 2, 128>}]} {
    %c0_i32 = arith.constant 0 : i32
    %0 = arith.cmpi eq, %arg0, %c0_i32 : i32
    %c1_i32 = arith.constant 1 : i32
    %1 = arith.cmpi eq, %arg0, %c1_i32 : i32
    %2 = arith.extui %0 : i1 to i32
    %c0_i32_0 = arith.constant 0 : i32
    %3 = arith.cmpi ne, %2, %c0_i32_0 : i32
    scf.if %3 {
      %cst_42 = arith.constant 0.000000e+00 : f32
      %142 = vector.broadcast %cst_42 : f32 to vector<2x128xf32>
      %c0_43 = arith.constant 0 : index
      %c0_44 = arith.constant 0 : index
      %143 = vector.load %arg4[%c0_43, %c0_44] : memref<2x128xf32, #tpu.memory_space<vmem>>, vector<2x128xf32>
      tpu.vector_store %arg4[%c0_43, %c0_44], %142 {strides = array<i32>} : memref<2x128xf32, #tpu.memory_space<vmem>>, vector<2x128xf32>,
      %cst_45 = arith.constant 0.000000e+00 : f32
      %144 = vector.broadcast %cst_45 : f32 to vector<2x128xf32>
      %c0_46 = arith.constant 0 : index
      %c0_47 = arith.constant 0 : index
      %145 = vector.load %arg5[%c0_46, %c0_47] : memref<2x128xf32, #tpu.memory_space<vmem>>, vector<2x128xf32>
      tpu.vector_store %arg5[%c0_46, %c0_47], %144 {strides = array<i32>} : memref<2x128xf32, #tpu.memory_space<vmem>>, vector<2x128xf32>,
    } else {
    }
    %c0 = arith.constant 0 : index
    %c0_1 = arith.constant 0 : index
    %4 = vector.load %arg4[%c0, %c0_1] : memref<2x128xf32, #tpu.memory_space<vmem>>, vector<2x128xf32>
    %c0_2 = arith.constant 0 : index
    %c0_3 = arith.constant 0 : index
    %5 = vector.load %arg5[%c0_2, %c0_3] : memref<2x128xf32, #tpu.memory_space<vmem>>, vector<2x128xf32>
    %c0_i32_4 = arith.constant 0 : i32
    %6 = arith.index_cast %c0_i32_4 : i32 to index
    %c0_5 = arith.constant 0 : index
    %c0_6 = arith.constant 0 : index
    %7 = vector.load %arg1[%6, %c0_5, %c0_6] : memref<4x2x512xbf16, #tpu.memory_space<vmem>>, vector<1x2x512xbf16>
    %8 = vector.shape_cast %7 : vector<1x2x512xbf16> to vector<2x512xbf16>
    %9 = arith.extf %8 : vector<2x512xbf16> to vector<2x512xf32>
    %10 = arith.truncf %4 : vector<2x128xf32> to vector<2x128xbf16>
    %c0_7 = arith.constant 0 : index
    %c0_8 = arith.constant 0 : index
    %11 = vector.load %arg2[%c0_7, %c0_8] : memref<128x512xbf16, #tpu.memory_space<vmem>>, vector<128x512xbf16>
    %cst = arith.constant dense<0.000000e+00> : vector<2x512xf32>
    %12 = tpu.matmul %10, %11, %cst {dimension_numbers = #tpu.dot_dimension_numbers<[1], [0], [0], [1], [0, 0, 1, 1], [], []>} : vector<2x128xbf16>, vector<128x512xbf16>, vector<2x512xf32> -> vector<2x512xf32>
    %13 = arith.addf %9, %12 : vector<2x512xf32>
    %14 = vector.extract_strided_slice %13 {offsets = [0, 0], sizes = [2, 128], strides = [1, 1]} : vector<2x512xf32> to vector<2x128xf32>
    %15 = arith.negf %14 : vector<2x128xf32>
    %16 = math.exp %15 : vector<2x128xf32>
    %cst_9 = arith.constant 1.000000e+00 : f32
    %17 = vector.broadcast %cst_9 : f32 to vector<2x128xf32>
    %18 = arith.addf %17, %16 : vector<2x128xf32>
    %19 = arith.divf %17, %18 : vector<2x128xf32>
    %20 = vector.extract_strided_slice %13 {offsets = [0, 128], sizes = [2, 128], strides = [1, 1]} : vector<2x512xf32> to vector<2x128xf32>
    %21 = arith.negf %20 : vector<2x128xf32>
    %22 = math.exp %21 : vector<2x128xf32>
    %cst_10 = arith.constant 1.000000e+00 : f32
    %23 = vector.broadcast %cst_10 : f32 to vector<2x128xf32>
    %24 = arith.addf %23, %22 : vector<2x128xf32>
    %25 = arith.divf %23, %24 : vector<2x128xf32>
    %26 = vector.extract_strided_slice %13 {offsets = [0, 256], sizes = [2, 128], strides = [1, 1]} : vector<2x512xf32> to vector<2x128xf32>
    %27 = math.tanh %26 : vector<2x128xf32>
    %28 = vector.extract_strided_slice %13 {offsets = [0, 384], sizes = [2, 128], strides = [1, 1]} : vector<2x512xf32> to vector<2x128xf32>
    %29 = arith.negf %28 : vector<2x128xf32>
    %30 = math.exp %29 : vector<2x128xf32>
    %cst_11 = arith.constant 1.000000e+00 : f32
    %31 = vector.broadcast %cst_11 : f32 to vector<2x128xf32>
    %32 = arith.addf %31, %30 : vector<2x128xf32>
    %33 = arith.divf %31, %32 : vector<2x128xf32>
    %34 = arith.mulf %25, %5 : vector<2x128xf32>
    %35 = arith.mulf %19, %27 : vector<2x128xf32>
    %36 = arith.addf %34, %35 : vector<2x128xf32>
    %37 = math.tanh %36 : vector<2x128xf32>
    %38 = arith.mulf %33, %37 : vector<2x128xf32>
    %c1_i32_12 = arith.constant 1 : i32
    %39 = arith.index_cast %c1_i32_12 : i32 to index
    %c0_13 = arith.constant 0 : index
    %c0_14 = arith.constant 0 : index
    %40 = vector.load %arg1[%39, %c0_13, %c0_14] : memref<4x2x512xbf16, #tpu.memory_space<vmem>>, vector<1x2x512xbf16>
    %41 = vector.shape_cast %40 : vector<1x2x512xbf16> to vector<2x512xbf16>
    %42 = arith.extf %41 : vector<2x512xbf16> to vector<2x512xf32>
    %43 = arith.truncf %38 : vector<2x128xf32> to vector<2x128xbf16>
    %c0_15 = arith.constant 0 : index
    %c0_16 = arith.constant 0 : index
    %44 = vector.load %arg2[%c0_15, %c0_16] : memref<128x512xbf16, #tpu.memory_space<vmem>>, vector<128x512xbf16>
    %cst_17 = arith.constant dense<0.000000e+00> : vector<2x512xf32>
    %45 = tpu.matmul %43, %44, %cst_17 {dimension_numbers = #tpu.dot_dimension_numbers<[1], [0], [0], [1], [0, 0, 1, 1], [], []>} : vector<2x128xbf16>, vector<128x512xbf16>, vector<2x512xf32> -> vector<2x512xf32>
    %46 = arith.addf %42, %45 : vector<2x512xf32>
    %47 = vector.extract_strided_slice %46 {offsets = [0, 0], sizes = [2, 128], strides = [1, 1]} : vector<2x512xf32> to vector<2x128xf32>
    %48 = arith.negf %47 : vector<2x128xf32>
    %49 = math.exp %48 : vector<2x128xf32>
    %cst_18 = arith.constant 1.000000e+00 : f32
    %50 = vector.broadcast %cst_18 : f32 to vector<2x128xf32>
    %51 = arith.addf %50, %49 : vector<2x128xf32>
    %52 = arith.divf %50, %51 : vector<2x128xf32>
    %53 = vector.extract_strided_slice %46 {offsets = [0, 128], sizes = [2, 128], strides = [1, 1]} : vector<2x512xf32> to vector<2x128xf32>
    %54 = arith.negf %53 : vector<2x128xf32>
    %55 = math.exp %54 : vector<2x128xf32>
    %cst_19 = arith.constant 1.000000e+00 : f32
    %56 = vector.broadcast %cst_19 : f32 to vector<2x128xf32>
    %57 = arith.addf %56, %55 : vector<2x128xf32>
    %58 = arith.divf %56, %57 : vector<2x128xf32>
    %59 = vector.extract_strided_slice %46 {offsets = [0, 256], sizes = [2, 128], strides = [1, 1]} : vector<2x512xf32> to vector<2x128xf32>
    %60 = math.tanh %59 : vector<2x128xf32>
    %61 = vector.extract_strided_slice %46 {offsets = [0, 384], sizes = [2, 128], strides = [1, 1]} : vector<2x512xf32> to vector<2x128xf32>
    %62 = arith.negf %61 : vector<2x128xf32>
    %63 = math.exp %62 : vector<2x128xf32>
    %cst_20 = arith.constant 1.000000e+00 : f32
    %64 = vector.broadcast %cst_20 : f32 to vector<2x128xf32>
    %65 = arith.addf %64, %63 : vector<2x128xf32>
    %66 = arith.divf %64, %65 : vector<2x128xf32>
    %67 = arith.mulf %58, %36 : vector<2x128xf32>
    %68 = arith.mulf %52, %60 : vector<2x128xf32>
    %69 = arith.addf %67, %68 : vector<2x128xf32>
    %70 = math.tanh %69 : vector<2x128xf32>
    %71 = arith.mulf %66, %70 : vector<2x128xf32>
    %c2_i32 = arith.constant 2 : i32
    %72 = arith.index_cast %c2_i32 : i32 to index
    %c0_21 = arith.constant 0 : index
    %c0_22 = arith.constant 0 : index
    %73 = vector.load %arg1[%72, %c0_21, %c0_22] : memref<4x2x512xbf16, #tpu.memory_space<vmem>>, vector<1x2x512xbf16>
    %74 = vector.shape_cast %73 : vector<1x2x512xbf16> to vector<2x512xbf16>
    %75 = arith.extf %74 : vector<2x512xbf16> to vector<2x512xf32>
    %76 = arith.truncf %71 : vector<2x128xf32> to vector<2x128xbf16>
    %c0_23 = arith.constant 0 : index
    %c0_24 = arith.constant 0 : index
    %77 = vector.load %arg2[%c0_23, %c0_24] : memref<128x512xbf16, #tpu.memory_space<vmem>>, vector<128x512xbf16>
    %cst_25 = arith.constant dense<0.000000e+00> : vector<2x512xf32>
    %78 = tpu.matmul %76, %77, %cst_25 {dimension_numbers = #tpu.dot_dimension_numbers<[1], [0], [0], [1], [0, 0, 1, 1], [], []>} : vector<2x128xbf16>, vector<128x512xbf16>, vector<2x512xf32> -> vector<2x512xf32>
    %79 = arith.addf %75, %78 : vector<2x512xf32>
    %80 = vector.extract_strided_slice %79 {offsets = [0, 0], sizes = [2, 128], strides = [1, 1]} : vector<2x512xf32> to vector<2x128xf32>
    %81 = arith.negf %80 : vector<2x128xf32>
    %82 = math.exp %81 : vector<2x128xf32>
    %cst_26 = arith.constant 1.000000e+00 : f32
    %83 = vector.broadcast %cst_26 : f32 to vector<2x128xf32>
    %84 = arith.addf %83, %82 : vector<2x128xf32>
    %85 = arith.divf %83, %84 : vector<2x128xf32>
    %86 = vector.extract_strided_slice %79 {offsets = [0, 128], sizes = [2, 128], strides = [1, 1]} : vector<2x512xf32> to vector<2x128xf32>
    %87 = arith.negf %86 : vector<2x128xf32>
    %88 = math.exp %87 : vector<2x128xf32>
    %cst_27 = arith.constant 1.000000e+00 : f32
    %89 = vector.broadcast %cst_27 : f32 to vector<2x128xf32>
    %90 = arith.addf %89, %88 : vector<2x128xf32>
    %91 = arith.divf %89, %90 : vector<2x128xf32>
    %92 = vector.extract_strided_slice %79 {offsets = [0, 256], sizes = [2, 128], strides = [1, 1]} : vector<2x512xf32> to vector<2x128xf32>
    %93 = math.tanh %92 : vector<2x128xf32>
    %94 = vector.extract_strided_slice %79 {offsets = [0, 384], sizes = [2, 128], strides = [1, 1]} : vector<2x512xf32> to vector<2x128xf32>
    %95 = arith.negf %94 : vector<2x128xf32>
    %96 = math.exp %95 : vector<2x128xf32>
    %cst_28 = arith.constant 1.000000e+00 : f32
    %97 = vector.broadcast %cst_28 : f32 to vector<2x128xf32>
    %98 = arith.addf %97, %96 : vector<2x128xf32>
    %99 = arith.divf %97, %98 : vector<2x128xf32>
    %100 = arith.mulf %91, %69 : vector<2x128xf32>
    %101 = arith.mulf %85, %93 : vector<2x128xf32>
    %102 = arith.addf %100, %101 : vector<2x128xf32>
    %103 = math.tanh %102 : vector<2x128xf32>
    %104 = arith.mulf %99, %103 : vector<2x128xf32>
    %c3_i32 = arith.constant 3 : i32
    %105 = arith.index_cast %c3_i32 : i32 to index
    %c0_29 = arith.constant 0 : index
    %c0_30 = arith.constant 0 : index
    %106 = vector.load %arg1[%105, %c0_29, %c0_30] : memref<4x2x512xbf16, #tpu.memory_space<vmem>>, vector<1x2x512xbf16>
    %107 = vector.shape_cast %106 : vector<1x2x512xbf16> to vector<2x512xbf16>
    %108 = arith.extf %107 : vector<2x512xbf16> to vector<2x512xf32>
    %109 = arith.truncf %104 : vector<2x128xf32> to vector<2x128xbf16>
    %c0_31 = arith.constant 0 : index
    %c0_32 = arith.constant 0 : index
    %110 = vector.load %arg2[%c0_31, %c0_32] : memref<128x512xbf16, #tpu.memory_space<vmem>>, vector<128x512xbf16>
    %cst_33 = arith.constant dense<0.000000e+00> : vector<2x512xf32>
    %111 = tpu.matmul %109, %110, %cst_33 {dimension_numbers = #tpu.dot_dimension_numbers<[1], [0], [0], [1], [0, 0, 1, 1], [], []>} : vector<2x128xbf16>, vector<128x512xbf16>, vector<2x512xf32> -> vector<2x512xf32>
    %112 = arith.addf %108, %111 : vector<2x512xf32>
    %113 = vector.extract_strided_slice %112 {offsets = [0, 0], sizes = [2, 128], strides = [1, 1]} : vector<2x512xf32> to vector<2x128xf32>
    %114 = arith.negf %113 : vector<2x128xf32>
    %115 = math.exp %114 : vector<2x128xf32>
    %cst_34 = arith.constant 1.000000e+00 : f32
    %116 = vector.broadcast %cst_34 : f32 to vector<2x128xf32>
    %117 = arith.addf %116, %115 : vector<2x128xf32>
    %118 = arith.divf %116, %117 : vector<2x128xf32>
    %119 = vector.extract_strided_slice %112 {offsets = [0, 128], sizes = [2, 128], strides = [1, 1]} : vector<2x512xf32> to vector<2x128xf32>
    %120 = arith.negf %119 : vector<2x128xf32>
    %121 = math.exp %120 : vector<2x128xf32>
    %cst_35 = arith.constant 1.000000e+00 : f32
    %122 = vector.broadcast %cst_35 : f32 to vector<2x128xf32>
    %123 = arith.addf %122, %121 : vector<2x128xf32>
    %124 = arith.divf %122, %123 : vector<2x128xf32>
    %125 = vector.extract_strided_slice %112 {offsets = [0, 256], sizes = [2, 128], strides = [1, 1]} : vector<2x512xf32> to vector<2x128xf32>
    %126 = math.tanh %125 : vector<2x128xf32>
    %127 = vector.extract_strided_slice %112 {offsets = [0, 384], sizes = [2, 128], strides = [1, 1]} : vector<2x512xf32> to vector<2x128xf32>
    %128 = arith.negf %127 : vector<2x128xf32>
    %129 = math.exp %128 : vector<2x128xf32>
    %cst_36 = arith.constant 1.000000e+00 : f32
    %130 = vector.broadcast %cst_36 : f32 to vector<2x128xf32>
    %131 = arith.addf %130, %129 : vector<2x128xf32>
    %132 = arith.divf %130, %131 : vector<2x128xf32>
    %133 = arith.mulf %124, %102 : vector<2x128xf32>
    %134 = arith.mulf %118, %126 : vector<2x128xf32>
    %135 = arith.addf %133, %134 : vector<2x128xf32>
    %136 = math.tanh %135 : vector<2x128xf32>
    %137 = arith.mulf %132, %136 : vector<2x128xf32>
    %c4_i32 = arith.constant 4 : i32
    %c0_37 = arith.constant 0 : index
    %c0_38 = arith.constant 0 : index
    %138 = vector.load %arg4[%c0_37, %c0_38] : memref<2x128xf32, #tpu.memory_space<vmem>>, vector<2x128xf32>
    tpu.vector_store %arg4[%c0_37, %c0_38], %137 {strides = array<i32>} : memref<2x128xf32, #tpu.memory_space<vmem>>, vector<2x128xf32>,
    %c0_39 = arith.constant 0 : index
    %c0_40 = arith.constant 0 : index
    %139 = vector.load %arg5[%c0_39, %c0_40] : memref<2x128xf32, #tpu.memory_space<vmem>>, vector<2x128xf32>
    tpu.vector_store %arg5[%c0_39, %c0_40], %135 {strides = array<i32>} : memref<2x128xf32, #tpu.memory_space<vmem>>, vector<2x128xf32>,
    %140 = arith.extui %1 : i1 to i32
    %c0_i32_41 = arith.constant 0 : i32
    %141 = arith.cmpi ne, %140, %c0_i32_41 : i32
    scf.if %141 {
      %c0_42 = arith.constant 0 : index
      %c0_43 = arith.constant 0 : index
      %142 = vector.load %arg3[%c0_42, %c0_43] : memref<2x128xf32, #tpu.memory_space<vmem>>, vector<2x128xf32>
      tpu.vector_store %arg3[%c0_42, %c0_43], %137 {strides = array<i32>} : memref<2x128xf32, #tpu.memory_space<vmem>>, vector<2x128xf32>,
    } else {
    }
    return
  }
  func.func @transform_0(%arg0: i32) -> (i32, i32, i32) {
    %c0_i32 = arith.constant 0 : i32
    %c0_i32_0 = arith.constant 0 : i32
    %c0_i32_1 = arith.constant 0 : i32
    return %arg0, %c0_i32, %c0_i32_0 : i32, i32, i32
  }
  func.func @transform_1(%arg0: i32) -> (i32, i32) {
    %c0_i32 = arith.constant 0 : i32
    %c0_i32_0 = arith.constant 0 : i32
    %c0_i32_1 = arith.constant 0 : i32
    return %c0_i32, %c0_i32_0 : i32, i32
  }
  func.func @transform_2(%arg0: i32) -> (i32, i32) {
    %c0_i32 = arith.constant 0 : i32
    %c0_i32_0 = arith.constant 0 : i32
    %c0_i32_1 = arith.constant 0 : i32
    return %c0_i32, %c0_i32_0 : i32, i32
  }
}

</mosaic_0001>

<bundles_post_ra>
// kernel: char_lstm_forward.1
= control target key start
LH: loop header
LB: loop body
LE: loop exit
PB: predicated region body
PF: predicated region fallthrough
CT: control target
= control target key end

     0   :  { %7 = vsyncpa [#allocation5], 0  ;;  %s1189_s9 = smov 0   ;;  %s1542_s0 = inlined_call_operand.vmem [shape: bf16[8,2,512], index: 0, kind: input, shape index: {}]   ;;  %s1543_s1 = inlined_call_operand.vmem [shape: bf16[128,512], index: 1, kind: input, shape index: {}]   ;;  %s1544_s2 = inlined_call_operand.hbm [shape: f32[2,128], index: 2, kind: output, shape index: {}]  }
   0x1 LB: > { %s1195_s10 = sadd.s32 4294967295, %s1168_s9   ;;  %p948_p0 = scmp.ge.s32.totalorder %s1168_s9, 1  ;;  %s1168_s9 = sphi %s1189_s9, %s13_s9  }
   0x2   : > { %p109_p1 = scmp.lt.s32.totalorder %s1168_s9, 3 }
   0x4   : > { %p110_p2 = pnand %p948_p0, %p109_p1 }
   0x5   : > { %s949_s11 = sshll.u32 (!%p110_p2), %s1195_s10, 2  ;;  %p951_p4 = scmp.ne.s32.totalorder (!%p110_p2), %s1195_s10, 0 }
   0x6   : > { %113 = sbr.rel (%p110_p2) target bundleno = 1103 (0x44f), region = 28  ;;  %p127_p3 = scmp.lt.s32.totalorder (!%p110_p2), %s949_s11, 7 }
   0xb   : > { %s1546_s11 = smov (!%p127_p3, %s949_s11), 7  ;;  %137 = sbr.rel (%p951_p4) target bundleno = 18 (0x12), region = 32 }
   0xc   : > { %s950_s12 = sshll.u32 %s1546_s11, 2 }
   0xd   : > { %s1203_s15 = scalar_lea.vmem %s1542_s0, %s950_s12 }
  0x10   : > { %v1170_v0 = vmov 0.0  }
  0x11   : > { %138 = vst [vmem:[#allocation2] sm:$0x3] %v1170_v0  ;;  %139 = vst [vmem:[#allocation3] sm:$0x3] %v1170_v0 }
  0x12 PF: > { %v1209_v1 = vld [vmem:[%s1543_s1 + $0xe4] ss:$16 sps:$4 sm:$0xff]   ;;  %v1214_v2 = vld [vmem:[%s1543_s1 + $0xec] ss:$16 sps:$4 sm:$0xff]   ;;  %v1171_v3 = vmov 0   ;;  %v428_v38 = vlaneseq  ;;  %p999_p5 = scmp.ne.s32.totalorder %s1195_s10, 1 }
  0x13   : > { %369 = vmatprep.mubr.bf16.mxu0 %v1171_v3  ;;  %410 = vmatprep.mubr.bf16.mxu1 %v1171_v3  ;;  %v1222_v4 = vld [vmem:[%s1543_s1 + $0xe0] ss:$16 sps:$4 sm:$0xff]   ;;  %v1227_v5 = vld [vmem:[%s1543_s1 + $0xe8] ss:$16 sps:$4 sm:$0xff]   ;;  %v1233_v6 = vld [vmem:[%s1543_s1 + $0xc4] ss:$16 sps:$4 sm:$0xff]  }
  0x14   : > { %337 = vmatprep.subr.bf16.mxu0 %v1209_v1  ;;  %378 = vmatprep.subr.bf16.mxu1 %v1214_v2  ;;  %v1240_v7 = vld [vmem:[%s1543_s1 + $0xcc] ss:$16 sps:$4 sm:$0xff]   ;;  %v1245_v8 = vld [vmem:[%s1543_s1 + $0xc0] ss:$16 sps:$4 sm:$0xff]   ;;  %v1251_v9 = vld [vmem:[%s1543_s1 + $0xc8] ss:$16 sps:$4 sm:$0xff]  }
  0x15   : > { %338 = vmatpush1.bf16.msra.mxu0 %v1222_v4  ;;  %379 = vmatpush1.bf16.msra.mxu1 %v1227_v5  ;;  %v1257_v10 = vld [vmem:[%s1543_s1 + $0xa4] ss:$16 sps:$4 sm:$0xff]   ;;  %v1262_v11 = vld [vmem:[%s1543_s1 + $0xac] ss:$16 sps:$4 sm:$0xff]   ;;  %v1267_v12 = vld [vmem:[%s1543_s1 + $0xa0] ss:$16 sps:$4 sm:$0xff]  }
  0x16   : > { %339 = vmatprep.subr.bf16.mxu0 %v1233_v6  ;;  %380 = vmatprep.subr.bf16.mxu1 %v1240_v7  ;;  %v1272_v13 = vld [vmem:[%s1543_s1 + $0xa8] ss:$16 sps:$4 sm:$0xff]   ;;  %v1279_v14 = vld [vmem:[%s1543_s1 + $0x84] ss:$16 sps:$4 sm:$0xff]   ;;  %v1286_v15 = vld [vmem:[%s1543_s1 + $0x8c] ss:$16 sps:$4 sm:$0xff]  }
  0x17   : > { %v1291_v16 = vld [vmem:[%s1543_s1 + $0x80] ss:$16 sps:$4 sm:$0xff]   ;;  %v1298_v17 = vld [vmem:[%s1543_s1 + $0x88] ss:$16 sps:$4 sm:$0xff]   ;;  %v1303_v18 = vld [vmem:[%s1543_s1 + $0x64] ss:$16 sps:$4 sm:$0xff]  }
  0x18   : > { %v1310_v19 = vld [vmem:[%s1543_s1 + $0x6c] ss:$16 sps:$4 sm:$0xff]   ;;  %v1315_v20 = vld [vmem:[%s1543_s1 + $0x60] ss:$16 sps:$4 sm:$0xff]   ;;  %v1320_v21 = vld [vmem:[%s1543_s1 + $0x68] ss:$16 sps:$4 sm:$0xff]  }
  0x19   : > { %340 = vmatpush1.bf16.msra.mxu0 %v1245_v8  ;;  %381 = vmatpush1.bf16.msra.mxu1 %v1251_v9  ;;  %v1327_v22 = vld [vmem:[%s1543_s1 + $0x44] ss:$16 sps:$4 sm:$0xff]   ;;  %v1334_v23 = vld [vmem:[%s1543_s1 + $0x4c] ss:$16 sps:$4 sm:$0xff]   ;;  %v1341_v24 = vld [vmem:[%s1543_s1 + $0x40] ss:$16 sps:$4 sm:$0xff]  }
  0x1a   : > { %341 = vmatprep.subr.bf16.mxu0 %v1257_v10  ;;  %382 = vmatprep.subr.bf16.mxu1 %v1262_v11  ;;  %v1346_v25 = vld [vmem:[%s1543_s1 + $0x48] ss:$16 sps:$4 sm:$0xff]   ;;  %v1353_v26 = vld [vmem:[%s1543_s1 + $0x24] ss:$16 sps:$4 sm:$0xff]   ;;  %v1358_v27 = vld [vmem:[%s1543_s1 + $0x2c] ss:$16 sps:$4 sm:$0xff]  }
  0x1b   : > { %v1365_v28 = vld [vmem:[%s1543_s1 + $0x20] ss:$16 sps:$4 sm:$0xff]   ;;  %v1370_v29 = vld [vmem:[%s1543_s1 + $0x28] ss:$16 sps:$4 sm:$0xff]   ;;  %v1377_v30 = vld [vmem:[%s1543_s1 + $0x4] ss:$16 sps:$4 sm:$0xff]  }
  0x1c   : > { %v1382_v31 = vld [vmem:[%s1543_s1 + $0xc] ss:$16 sps:$4 sm:$0xff]   ;;  %v1389_v32 = vld [vmem:[%s1543_s1] ss:$16 sps:$4 sm:$0xff]   ;;  %v1394_v33 = vld [vmem:[%s1543_s1 + $0x8] ss:$16 sps:$4 sm:$0xff]  }
  0x1d   : > { %342 = vmatpush1.bf16.msra.mxu0 %v1267_v12  ;;  %383 = vmatpush1.bf16.msra.mxu1 %v1272_v13  ;;  %v140_v34 = vld [vmem:[#allocation2] sm:$0x3]  ;;  %v1172_v36 = vmov 1983009808   ;;  %v429_v40 = vshrl.u32 %v428_v38, 7 }
  0x1e   : > { %343 = vmatprep.subr.bf16.mxu0 %v1279_v14  ;;  %384 = vmatprep.subr.bf16.mxu1 %v1286_v15  ;;  %v144_v35 = vpack.c.bf16 %v140_v34, %v140_v34  ;;  %v426_v37 = vunpack.c.l.s4 %v1172_v36  ;;  %v1439_v45 = vld [vmem:[%s1203_s15] sm:$0xff]  }
  0x1f   : > { %v143_v52 = vunpack.c.l.bf16 %v1439_v45 }
  0x20   : > { %v427_v39 = vunpack.c.0.s8 %v426_v37 }
  0x21   : > { %344 = vmatpush1.bf16.msra.mxu0 %v1291_v16  ;;  %385 = vmatpush1.bf16.msra.mxu1 %v1298_v17 }
  0x22   : > { %345 = vmatprep.subr.bf16.mxu0 %v1303_v18  ;;  %386 = vmatprep.subr.bf16.mxu1 %v1310_v19  ;;  %v1436_v43 = vsub.s32 %v427_v39, %v429_v40  ;;  %v141_v39 = vld [vmem:[#allocation3] sm:$0x3] }
  0x25   : > { %346 = vmatpush1.bf16.msra.mxu0 %v1315_v20  ;;  %387 = vmatpush1.bf16.msra.mxu1 %v1320_v21 }
  0x26   : > { %347 = vmatprep.subr.bf16.mxu0 %v1327_v22  ;;  %388 = vmatprep.subr.bf16.mxu1 %v1334_v23 }
  0x29   : > { %348 = vmatpush1.bf16.msra.mxu0 %v1341_v24  ;;  %389 = vmatpush1.bf16.msra.mxu1 %v1346_v25 }
  0x2a   : > { %349 = vmatprep.subr.bf16.mxu0 %v1353_v26  ;;  %390 = vmatprep.subr.bf16.mxu1 %v1358_v27 }
  0x2d   : > { %350 = vmatpush1.bf16.msra.mxu0 %v1365_v28  ;;  %391 = vmatpush1.bf16.msra.mxu1 %v1370_v29 }
  0x2e   : > { %351 = vmatprep.subr.bf16.mxu0 %v1377_v30  ;;  %392 = vmatprep.subr.bf16.mxu1 %v1382_v31 }
  0x31   : > { %352 = vmatpush1.bf16.msra.mxu0 %v1389_v32  ;;  %393 = vmatpush1.bf16.msra.mxu1 %v1394_v33 }
  0x32   : > { %477 = vmatprep.subr.bf16.mxu0 %v1209_v1  ;;  %518 = vmatprep.subr.bf16.mxu1 %v1214_v2 }
  0x34   : > { %370 = vmatmul.mubr.bf16.vlgmr.msra.gmra.mxu0 %v144_v35  ;;  %411 = vmatmul.mubr.bf16.vlgmr.msra.gmra.mxu1 %v144_v35 }
  0x35   : > { %478 = vmatpush1.bf16.msra.mxu0 %v1222_v4  ;;  %519 = vmatpush1.bf16.msra.mxu1 %v1227_v5 }
  0x36   : > { %479 = vmatprep.subr.bf16.mxu0 %v1233_v6  ;;  %520 = vmatprep.subr.bf16.mxu1 %v1240_v7 }
  0x37   : > { %509 = vmatprep.mubr.bf16.mxu0 %v1171_v3  ;;  %550 = vmatprep.mubr.bf16.mxu1 %v1171_v3 }
  0x39   : > { %480 = vmatpush1.bf16.msra.mxu0 %v1245_v8  ;;  %521 = vmatpush1.bf16.msra.mxu1 %v1251_v9 }
  0x3a   : > { %481 = vmatprep.subr.bf16.mxu0 %v1257_v10  ;;  %522 = vmatprep.subr.bf16.mxu1 %v1262_v11 }
  0x3d   : > { %482 = vmatpush1.bf16.msra.mxu0 %v1267_v12  ;;  %523 = vmatpush1.bf16.msra.mxu1 %v1272_v13 }
  0x3e   : > { %483 = vmatprep.subr.bf16.mxu0 %v1279_v14  ;;  %524 = vmatprep.subr.bf16.mxu1 %v1286_v15 }
  0x41   : > { %484 = vmatpush1.bf16.msra.mxu0 %v1291_v16  ;;  %525 = vmatpush1.bf16.msra.mxu1 %v1298_v17 }
  0x42   : > { %485 = vmatprep.subr.bf16.mxu0 %v1303_v18  ;;  %526 = vmatprep.subr.bf16.mxu1 %v1310_v19 }
  0x45   : > { %486 = vmatpush1.bf16.msra.mxu0 %v1315_v20  ;;  %527 = vmatpush1.bf16.msra.mxu1 %v1320_v21 }
  0x46   : > { %487 = vmatprep.subr.bf16.mxu0 %v1327_v22  ;;  %528 = vmatprep.subr.bf16.mxu1 %v1334_v23 }
  0x49   : > { %488 = vmatpush1.bf16.msra.mxu0 %v1341_v24  ;;  %529 = vmatpush1.bf16.msra.mxu1 %v1346_v25 }
  0x4a   : > { %489 = vmatprep.subr.bf16.mxu0 %v1353_v26  ;;  %530 = vmatprep.subr.bf16.mxu1 %v1358_v27 }
  0x4d   : > { %490 = vmatpush1.bf16.msra.mxu0 %v1365_v28  ;;  %531 = vmatpush1.bf16.msra.mxu1 %v1370_v29 }
  0x4e   : > { %491 = vmatprep.subr.bf16.mxu0 %v1377_v30  ;;  %532 = vmatprep.subr.bf16.mxu1 %v1382_v31 }
  0x51   : > { %492 = vmatpush1.bf16.msra.mxu0 %v1389_v32  ;;  %533 = vmatpush1.bf16.msra.mxu1 %v1394_v33 }
  0x52   : > { %617 = vmatprep.subr.bf16.mxu0 %v1209_v1  ;;  %658 = vmatprep.subr.bf16.mxu1 %v1214_v2 }
  0xf4   : > { %v371_v41 = vpop.f32.mrf.mxu0  ;;  %v412_v42 = vpop.f32.mrf.mxu1 }
  0xf6   : > { %v373_v44 = vpop.f32.mrf.mxu0  ;;  %v414_v46 = vpop.f32.mrf.mxu1 }
  0xf7   : > { %v423_v47 = vcombine.low %v371_v41, %v373_v44  ;;  %v424_v48 = vcombine.low %v412_v42, %v414_v46 }
  0xf8   : > { %v375_v49 = vpop.f32.mrf.mxu0  ;;  %v416_v50 = vpop.f32.mrf.mxu1 }
  0xf9   : > { %v431_v51 = vrot.slane %v423_v47, %v1436_v43  ;;  %v438_v53 = vrot.slane %v424_v48, %v1436_v43 }
  0xfa   : > { %v376_v54 = vpop.f32.mrf.mxu0  ;;  %v417_v55 = vpop.f32.mrf.mxu1 }
  0xfb   : > { %v439_v56 = vcombine.low %v431_v51, %v438_v53 }
  0xfd   : > { %v441_v57 = vadd.f32 %v439_v56, %v143_v52 }
  0xff   : > { %v984_v58 = vmul.f32 -1.442695, %v441_v57  ;;  %v449_v59 = vrot.slane %v441_v57, 2  ;;  %v460_v61 = vrot.slane %v441_v57, 6  ;;  %v457_v0 = vrot.slane %v441_v57, 4 }
 0x101   : > { %1070 = vpow2.f32 %v984_v58  ;;  %v985_v60 = vmul.f32 -1.442695, %v449_v59  ;;  %v986_v62 = vmul.f32 -1.442695, %v460_v61  ;;  %v475_v61 = vunpack.c.h.bf16 %v1439_v45 }
 0x103   : > { %1072 = vpow2.f32 %v985_v60 }
 0x104   : > { %1074 = vpow2.f32 %v986_v62 }
 0x10e   : > { %v1071_v63 = vpop.eup %1070 }
 0x10f   : > { %v445_v34 = vadd.f32 1.0, %v1071_v63 }
 0x110   : > { %v1073_v35 = vpop.eup %1072 }
 0x111   : > { %1076 = vrcp.f32 %v445_v34  ;;  %v454_v36 = vadd.f32 1.0, %v1073_v35  ;;  %v1075_v37 = vpop.eup %1074 }
 0x112   : > { %1078 = vtanh.f32 %v457_v0  ;;  %v465_v42 = vadd.f32 1.0, %v1075_v37 }
 0x113   : > { %1080 = vrcp.f32 %v454_v36 }
 0x114   : > { %1082 = vrcp.f32 %v465_v42 }
 0x11e   : > { %v1077_v38 = vpop.eup %1076 }
 0x11f   : > { %v1079_v40 = vpop.eup %1078 }
 0x120   : > { %v1081_v41 = vpop.eup %1080  ;;  %v469_v46 = vmul.f32 %v1079_v40, %v1077_v38 }
 0x121   : > { %v468_v44 = vmul.f32 %v1081_v41, %v141_v39  ;;  %v1083_v48 = vpop.eup %1082 }
 0x123   : > { %v1444_v47 = vadd.f32 %v469_v46, %v468_v44 }
 0x125   : > { %1084 = vtanh.f32 %v1444_v47 }
 0x132   : > { %v1085_v49 = vpop.eup %1084 }
 0x133   : > { %v472_v50 = vmul.f32 %v1085_v49, %v1083_v48 }
 0x135   : > { %v476_v51 = vpack.c.bf16 %v472_v50, %v472_v50 }
 0x137   : > { %510 = vmatmul.mubr.bf16.vlgmr.msra.gmra.mxu0 %v476_v51  ;;  %551 = vmatmul.mubr.bf16.vlgmr.msra.gmra.mxu1 %v476_v51 }
 0x138   : > { %618 = vmatpush1.bf16.msra.mxu0 %v1222_v4  ;;  %659 = vmatpush1.bf16.msra.mxu1 %v1227_v5 }
 0x139   : > { %619 = vmatprep.subr.bf16.mxu0 %v1233_v6  ;;  %660 = vmatprep.subr.bf16.mxu1 %v1240_v7 }
 0x13a   : > { %649 = vmatprep.mubr.bf16.mxu0 %v1171_v3  ;;  %690 = vmatprep.mubr.bf16.mxu1 %v1171_v3 }
 0x13c   : > { %620 = vmatpush1.bf16.msra.mxu0 %v1245_v8  ;;  %661 = vmatpush1.bf16.msra.mxu1 %v1251_v9 }
 0x13d   : > { %621 = vmatprep.subr.bf16.mxu0 %v1257_v10  ;;  %662 = vmatprep.subr.bf16.mxu1 %v1262_v11 }
 0x140   : > { %622 = vmatpush1.bf16.msra.mxu0 %v1267_v12  ;;  %663 = vmatpush1.bf16.msra.mxu1 %v1272_v13 }
 0x141   : > { %623 = vmatprep.subr.bf16.mxu0 %v1279_v14  ;;  %664 = vmatprep.subr.bf16.mxu1 %v1286_v15 }
 0x144   : > { %624 = vmatpush1.bf16.msra.mxu0 %v1291_v16  ;;  %665 = vmatpush1.bf16.msra.mxu1 %v1298_v17 }
 0x145   : > { %625 = vmatprep.subr.bf16.mxu0 %v1303_v18  ;;  %666 = vmatprep.subr.bf16.mxu1 %v1310_v19 }
 0x148   : > { %626 = vmatpush1.bf16.msra.mxu0 %v1315_v20  ;;  %667 = vmatpush1.bf16.msra.mxu1 %v1320_v21 }
 0x149   : > { %627 = vmatprep.subr.bf16.mxu0 %v1327_v22  ;;  %668 = vmatprep.subr.bf16.mxu1 %v1334_v23 }
 0x14c   : > { %628 = vmatpush1.bf16.msra.mxu0 %v1341_v24  ;;  %669 = vmatpush1.bf16.msra.mxu1 %v1346_v25 }
 0x14d   : > { %629 = vmatprep.subr.bf16.mxu0 %v1353_v26  ;;  %670 = vmatprep.subr.bf16.mxu1 %v1358_v27 }
 0x150   : > { %630 = vmatpush1.bf16.msra.mxu0 %v1365_v28  ;;  %671 = vmatpush1.bf16.msra.mxu1 %v1370_v29 }
 0x151   : > { %631 = vmatprep.subr.bf16.mxu0 %v1377_v30  ;;  %672 = vmatprep.subr.bf16.mxu1 %v1382_v31 }
 0x154   : > { %632 = vmatpush1.bf16.msra.mxu0 %v1389_v32  ;;  %673 = vmatpush1.bf16.msra.mxu1 %v1394_v33 }
 0x155   : > { %757 = vmatprep.subr.bf16.mxu0 %v1209_v1  ;;  %798 = vmatprep.subr.bf16.mxu1 %v1214_v2 }
 0x1f7   : > { %v511_v52 = vpop.f32.mrf.mxu0  ;;  %v552_v53 = vpop.f32.mrf.mxu1 }
 0x1f9   : > { %v513_v54 = vpop.f32.mrf.mxu0  ;;  %v554_v55 = vpop.f32.mrf.mxu1 }
 0x1fa   : > { %v563_v56 = vcombine.low %v511_v52, %v513_v54  ;;  %v564_v57 = vcombine.low %v552_v53, %v554_v55 }
 0x1fb   : > { %v515_v58 = vpop.f32.mrf.mxu0  ;;  %v556_v59 = vpop.f32.mrf.mxu1 }
 0x1fc   : > { %v571_v60 = vrot.slane %v563_v56, %v1436_v43  ;;  %v578_v62 = vrot.slane %v564_v57, %v1436_v43 }
 0x1fd   : > { %v516_v63 = vpop.f32.mrf.mxu0  ;;  %v557_v0 = vpop.f32.mrf.mxu1 }
 0x1fe   : > { %v579_v34 = vcombine.low %v571_v60, %v578_v62 }
 0x200   : > { %v581_v1 = vadd.f32 %v579_v34, %v475_v61 }
 0x202   : > { %v988_v35 = vmul.f32 -1.442695, %v581_v1  ;;  %v589_v2 = vrot.slane %v581_v1, 2  ;;  %v600_v37 = vrot.slane %v581_v1, 6  ;;  %v597_v40 = vrot.slane %v581_v1, 4 }
 0x204   : > { %1086 = vpow2.f32 %v988_v35  ;;  %v989_v36 = vmul.f32 -1.442695, %v589_v2  ;;  %v990_v38 = vmul.f32 -1.442695, %v600_v37 }
 0x206   : > { %1088 = vpow2.f32 %v989_v36 }
 0x207   : > { %1090 = vpow2.f32 %v990_v38 }
 0x211   : > { %v1087_v39 = vpop.eup %1086 }
 0x212   : > { %v585_v41 = vadd.f32 1.0, %v1087_v39 }
 0x213   : > { %v1089_v42 = vpop.eup %1088 }
 0x214   : > { %1092 = vrcp.f32 %v585_v41  ;;  %v594_v45 = vadd.f32 1.0, %v1089_v42  ;;  %v1091_v44 = vpop.eup %1090 }
 0x215   : > { %1094 = vtanh.f32 %v597_v40  ;;  %v605_v50 = vadd.f32 1.0, %v1091_v44 }
 0x216   : > { %1096 = vrcp.f32 %v594_v45 }
 0x217   : > { %1098 = vrcp.f32 %v605_v50 }
 0x221   : > { %v1093_v46 = vpop.eup %1092 }
 0x222   : > { %v1095_v48 = vpop.eup %1094 }
 0x223   : > { %v1097_v49 = vpop.eup %1096  ;;  %v609_v52 = vmul.f32 %v1095_v48, %v1093_v46 }
 0x224   : > { %v608_v51 = vmul.f32 %v1097_v49, %v1444_v47  ;;  %v1099_v54 = vpop.eup %1098 }
 0x226   : > { %v1485_v53 = vadd.f32 %v609_v52, %v608_v51 }
 0x228   : > { %1100 = vtanh.f32 %v1485_v53 }
 0x235   : > { %v1101_v55 = vpop.eup %1100 }
 0x236   : > { %v612_v56 = vmul.f32 %v1101_v55, %v1099_v54 }
 0x238   : > { %v616_v57 = vpack.c.bf16 %v612_v56, %v612_v56 }
 0x23a   : > { %650 = vmatmul.mubr.bf16.vlgmr.msra.gmra.mxu0 %v616_v57  ;;  %691 = vmatmul.mubr.bf16.vlgmr.msra.gmra.mxu1 %v616_v57 }
 0x23b   : > { %758 = vmatpush1.bf16.msra.mxu0 %v1222_v4  ;;  %799 = vmatpush1.bf16.msra.mxu1 %v1227_v5 }
 0x23c   : > { %759 = vmatprep.subr.bf16.mxu0 %v1233_v6  ;;  %800 = vmatprep.subr.bf16.mxu1 %v1240_v7  ;;  %v991_v6 = vld [vmem:[%s1203_s15 + $0x8] sm:$0xff]  }
 0x23d   : > { %789 = vmatprep.mubr.bf16.mxu0 %v1171_v3  ;;  %830 = vmatprep.mubr.bf16.mxu1 %v1171_v3  ;;  %v755_v40 = vunpack.c.h.bf16 %v991_v6 }
 0x23f   : > { %760 = vmatpush1.bf16.msra.mxu0 %v1245_v8  ;;  %801 = vmatpush1.bf16.msra.mxu1 %v1251_v9 }
 0x240   : > { %761 = vmatprep.subr.bf16.mxu0 %v1257_v10  ;;  %802 = vmatprep.subr.bf16.mxu1 %v1262_v11 }
 0x243   : > { %762 = vmatpush1.bf16.msra.mxu0 %v1267_v12  ;;  %803 = vmatpush1.bf16.msra.mxu1 %v1272_v13  ;;  %v615_v13 = vunpack.c.l.bf16 %v991_v6 }
 0x244   : > { %763 = vmatprep.subr.bf16.mxu0 %v1279_v14  ;;  %804 = vmatprep.subr.bf16.mxu1 %v1286_v15 }
 0x247   : > { %764 = vmatpush1.bf16.msra.mxu0 %v1291_v16  ;;  %805 = vmatpush1.bf16.msra.mxu1 %v1298_v17 }
 0x248   : > { %765 = vmatprep.subr.bf16.mxu0 %v1303_v18  ;;  %806 = vmatprep.subr.bf16.mxu1 %v1310_v19 }
 0x24b   : > { %766 = vmatpush1.bf16.msra.mxu0 %v1315_v20  ;;  %807 = vmatpush1.bf16.msra.mxu1 %v1320_v21 }
 0x24c   : > { %767 = vmatprep.subr.bf16.mxu0 %v1327_v22  ;;  %808 = vmatprep.subr.bf16.mxu1 %v1334_v23 }
 0x24f   : > { %768 = vmatpush1.bf16.msra.mxu0 %v1341_v24  ;;  %809 = vmatpush1.bf16.msra.mxu1 %v1346_v25 }
 0x250   : > { %769 = vmatprep.subr.bf16.mxu0 %v1353_v26  ;;  %810 = vmatprep.subr.bf16.mxu1 %v1358_v27 }
 0x253   : > { %770 = vmatpush1.bf16.msra.mxu0 %v1365_v28  ;;  %811 = vmatpush1.bf16.msra.mxu1 %v1370_v29 }
 0x254   : > { %771 = vmatprep.subr.bf16.mxu0 %v1377_v30  ;;  %812 = vmatprep.subr.bf16.mxu1 %v1382_v31 }
 0x257   : > { %772 = vmatpush1.bf16.msra.mxu0 %v1389_v32  ;;  %813 = vmatpush1.bf16.msra.mxu1 %v1394_v33 }
 0x2fa   : > { %v651_v3 = vpop.f32.mrf.mxu0  ;;  %v692_v4 = vpop.f32.mrf.mxu1 }
 0x2fc   : > { %v653_v5 = vpop.f32.mrf.mxu0  ;;  %v694_v7 = vpop.f32.mrf.mxu1 }
 0x2fd   : > { %v703_v8 = vcombine.low %v651_v3, %v653_v5  ;;  %v704_v9 = vcombine.low %v692_v4, %v694_v7 }
 0x2fe   : > { %v655_v10 = vpop.f32.mrf.mxu0  ;;  %v696_v11 = vpop.f32.mrf.mxu1 }
 0x2ff   : > { %v711_v12 = vrot.slane %v703_v8, %v1436_v43  ;;  %v718_v14 = vrot.slane %v704_v9, %v1436_v43 }
 0x300   : > { %v656_v15 = vpop.f32.mrf.mxu0  ;;  %v697_v16 = vpop.f32.mrf.mxu1 }
 0x301   : > { %v719_v17 = vcombine.low %v711_v12, %v718_v14 }
 0x303   : > { %v721_v18 = vadd.f32 %v719_v17, %v615_v13 }
 0x305   : > { %v992_v19 = vmul.f32 -1.442695, %v721_v18  ;;  %v729_v20 = vrot.slane %v721_v18, 2  ;;  %v740_v22 = vrot.slane %v721_v18, 6  ;;  %v737_v25 = vrot.slane %v721_v18, 4 }
 0x307   : > { %1102 = vpow2.f32 %v992_v19  ;;  %v993_v21 = vmul.f32 -1.442695, %v729_v20  ;;  %v994_v23 = vmul.f32 -1.442695, %v740_v22 }
 0x309   : > { %1104 = vpow2.f32 %v993_v21 }
 0x30a   : > { %1106 = vpow2.f32 %v994_v23 }
 0x314   : > { %v1103_v24 = vpop.eup %1102 }
 0x315   : > { %v725_v26 = vadd.f32 1.0, %v1103_v24 }
 0x316   : > { %v1105_v27 = vpop.eup %1104 }
 0x317   : > { %1108 = vrcp.f32 %v725_v26  ;;  %v734_v28 = vadd.f32 1.0, %v1105_v27  ;;  %v1107_v29 = vpop.eup %1106 }
 0x318   : > { %1110 = vtanh.f32 %v737_v25  ;;  %v745_v33 = vadd.f32 1.0, %v1107_v29 }
 0x319   : > { %1112 = vrcp.f32 %v734_v28 }
 0x31a   : > { %1114 = vrcp.f32 %v745_v33 }
 0x324   : > { %v1109_v30 = vpop.eup %1108 }
 0x325   : > { %v1111_v31 = vpop.eup %1110 }
 0x326   : > { %v1113_v32 = vpop.eup %1112  ;;  %v749_v58 = vmul.f32 %v1111_v31, %v1109_v30 }
 0x327   : > { %v748_v47 = vmul.f32 %v1113_v32, %v1485_v53  ;;  %v1115_v60 = vpop.eup %1114 }
 0x329   : > { %v750_v59 = vadd.f32 %v749_v58, %v748_v47 }
 0x32b   : > { %1116 = vtanh.f32 %v750_v59 }
 0x338   : > { %v1117_v61 = vpop.eup %1116 }
 0x339   : > { %v752_v62 = vmul.f32 %v1117_v61, %v1115_v60 }
 0x33b   : > { %v756_v63 = vpack.c.bf16 %v752_v62, %v752_v62 }
 0x33d   : > { %790 = vmatmul.mubr.bf16.vlgmr.msra.gmra.mxu0 %v756_v63  ;;  %831 = vmatmul.mubr.bf16.vlgmr.msra.gmra.mxu1 %v756_v63 }
 0x3fd   : > { %v791_v0 = vpop.f32.mrf.mxu0  ;;  %v832_v34 = vpop.f32.mrf.mxu1 }
 0x3ff   : > { %v793_v1 = vpop.f32.mrf.mxu0  ;;  %v834_v35 = vpop.f32.mrf.mxu1 }
 0x400   : > { %v843_v2 = vcombine.low %v791_v0, %v793_v1  ;;  %v844_v36 = vcombine.low %v832_v34, %v834_v35 }
 0x401   : > { %v795_v37 = vpop.f32.mrf.mxu0  ;;  %v836_v38 = vpop.f32.mrf.mxu1 }
 0x402   : > { %v851_v39 = vrot.slane %v843_v2, %v1436_v43  ;;  %v858_v41 = vrot.slane %v844_v36, %v1436_v43 }
 0x403   : > { %v796_v42 = vpop.f32.mrf.mxu0  ;;  %v837_v45 = vpop.f32.mrf.mxu1 }
 0x404   : > { %v859_v44 = vcombine.low %v851_v39, %v858_v41 }
 0x406   : > { %v861_v46 = vadd.f32 %v859_v44, %v755_v40 }
 0x408   : > { %v996_v48 = vmul.f32 -1.442695, %v861_v46  ;;  %v869_v49 = vrot.slane %v861_v46, 2  ;;  %v880_v51 = vrot.slane %v861_v46, 6  ;;  %v877_v54 = vrot.slane %v861_v46, 4 }
 0x40a   : > { %1118 = vpow2.f32 %v996_v48  ;;  %v997_v50 = vmul.f32 -1.442695, %v869_v49  ;;  %v998_v52 = vmul.f32 -1.442695, %v880_v51 }
 0x40c   : > { %1120 = vpow2.f32 %v997_v50 }
 0x40d   : > { %1122 = vpow2.f32 %v998_v52 }
 0x417   : > { %v1119_v53 = vpop.eup %1118 }
 0x418   : > { %v865_v55 = vadd.f32 1.0, %v1119_v53 }
 0x419   : > { %v1121_v56 = vpop.eup %1120 }
 0x41a   : > { %1124 = vrcp.f32 %v865_v55  ;;  %v874_v57 = vadd.f32 1.0, %v1121_v56  ;;  %v1123_v43 = vpop.eup %1122 }
 0x41b   : > { %1126 = vtanh.f32 %v877_v54  ;;  %v885_v6 = vadd.f32 1.0, %v1123_v43 }
 0x41c   : > { %1128 = vrcp.f32 %v874_v57 }
 0x41d   : > { %1130 = vrcp.f32 %v885_v6 }
 0x427   : > { %v1125_v3 = vpop.eup %1124 }
 0x428   : > { %v1127_v4 = vpop.eup %1126 }
 0x429   : > { %v1129_v5 = vpop.eup %1128  ;;  %v889_v8 = vmul.f32 %v1127_v4, %v1125_v3 }
 0x42a   : > { %v888_v7 = vmul.f32 %v1129_v5, %v750_v59  ;;  %v1131_v10 = vpop.eup %1130 }
 0x42c   : > { %v890_v9 = vadd.f32 %v889_v8, %v888_v7 }
 0x42e   : > { %1132 = vtanh.f32 %v890_v9  ;;  %894 = vst [vmem:[#allocation3] sm:$0x3] %v890_v9 }
 0x43a   : > { %897 = sbr.rel (%p999_p5) target bundleno = 1088 (0x440), region = 36 }
 0x43b   : > { %v1133_v11 = vpop.eup %1132 }
 0x43c   : > { %v892_v12 = vmul.f32 %v1133_v11, %v1131_v10 }
 0x43e   : > { %893 = vst [vmem:[#allocation2] sm:$0x3] %v892_v12 }
 0x43f   : > { %898 = vst [vmem:[#allocation4] sm:$0x3] %v892_v12 }
 0x440 PF: > { %p1008_p6 = scmp.eq.s32.totalorder %s1195_s10, 1  ;;  %s1173_s15 = smov [#allocation4]  }
 0x441   : > { %s906_s30 = sshll.u32 %s1173_s15, 4  ;;  %s907_s30 = int_to_ptr.vmem [resolvable:$true] %s906_s30 }
 0x442   : > { %s1134_s3 = scalar_lea.vmem %s907_s30, 32  ;;  %p1141_p10 = scmp.lt.s32.totalorder %s907_s30, %s907_s30 }
 0x443   : > { %p1135_p7 = scmp.ne.s32.totalorder %s907_s30, %s1134_s3  ;;  %p1142_p11 = scmp.lt.s32.totalorder %s1134_s3, %s1134_s3 }
 0x445   : > { %p1136_p8 = pnand %p1135_p7, %p1008_p6  ;;  %p1143_p12 = por %p1142_p11, %p1141_p10 }
 0x447   : > { %p1137_p9 = pneg %p1136_p8 }
 0x449   : > { %p1144_p13 = pnand %p1143_p12, %p1137_p9 }
 0x44b   : > { %1147 = shalt.err (!%p1144_p13)
}
 0x44c   : > { %1005 = dma.vmem_to_hbm [thread:$0]  (%p1008_p6), %s907_s30, 32, %s1544_s2, [#allocation5]  }
 0x44d   : > { %1163 = dma.done.wait (%p1008_p6), [#allocation5], 32  }
 0x44e   : > { %1165 = vsyncadd (%p1008_p6), [#allocation5], 4294967264 }
 0x44f PF: > { %s13_s9 = sadd.s32 1, %s1168_s9  }
 0x450   : > { %p10_p0 = scmp.ge.s32.totalorder %s13_s9, 4  }
 0x452   :  { %12 = sbr.rel (!%p10_p0) target bundleno = 1 (0x1), region = 66 }
 0x457   :  { %919 = vsyncpa [#allocation5], 1 }
 0x458   :  { %921 = vsyncpa [#allocation5 + $0x1], 1 }

</bundles_post_ra>
